<compile_context>
chip_gen: v7x
topology: tpu7x:2x2x1
jax: 0.10.0
libtpu: 0.0.40
codegen_flags: <defaults>
</compile_context>

<pallas_src>
import jax
import jax.numpy as jnp
from jax.experimental import pallas as pl
from jax.experimental.pallas import tpu as pltpu


# --------------------------------------------------------------------------- #
# Kernel
# --------------------------------------------------------------------------- #
def proxy_head_kernel(x_ref, w_ref, b_ref, o_ref):
    # x_ref: (TB, in_dim) native dtype, w_ref: (in_dim, out_dim_p) compute dtype,
    # b_ref: (1, out_dim_p) f32, o_ref: (TB, out_dim_p) output dtype.
    x = x_ref[...].astype(w_ref.dtype)                    # in-kernel cast (VPU, free)
    y = jnp.dot(x, w_ref[...], preferred_element_type=jnp.float32)
    y = y + b_ref[...]                                    # bias broadcast (f32)
    sq = jnp.sum(y * y, axis=-1, keepdims=True)           # (TB, 1) row reduce (XLU)
    # 1 / max(||y||, 1e-12) == rsqrt(max(||y||^2, 1e-24)); rsqrt -> EUP slot,
    # the normalize becomes a cheap VPU multiply over the tile.
    inv = jax.lax.rsqrt(jnp.maximum(sq, 1e-24))
    o_ref[...] = (y * inv).astype(o_ref.dtype)


# --------------------------------------------------------------------------- #
# Helpers
# --------------------------------------------------------------------------- #
def _round_up(n, m):
    return ((n + m - 1) // m) * m


def _vmem_capacity_bytes():
    """Physical VMEM of the local TPU generation; conservative fallback."""
    try:
        return int(pltpu.get_tpu_info().vmem_capacity_bytes)
    except Exception:
        return 64 * 1024 * 1024  # v7x-sized fallback is safe on every generation


_BUFFERED1_SUPPORTED = None


def _buffered1_supported():
    """One-time capability probe for pl.Buffered(1) (single-buffered params)."""
    global _BUFFERED1_SUPPORTED
    if _BUFFERED1_SUPPORTED is None:
        def _copy(a_ref, o_ref):
            o_ref[...] = a_ref[...]

        try:
            fn = pl.pallas_call(
                _copy,
                out_shape=jax.ShapeDtypeStruct((8, 128), jnp.float32),
                grid=(1,),
                in_specs=[pl.BlockSpec((8, 128), lambda i: (0, 0),
                                       pipeline_mode=pl.Buffered(1))],
                out_specs=pl.BlockSpec((8, 128), lambda i: (0, 0)),
            )
            jax.block_until_ready(fn(jnp.zeros((8, 128), jnp.float32)))
            _BUFFERED1_SUPPORTED = True
        except Exception:
            _BUFFERED1_SUPPORTED = False
    return _BUFFERED1_SUPPORTED


# --------------------------------------------------------------------------- #
# Parameter preparation (do ONCE per parameter set, cache the result)
# --------------------------------------------------------------------------- #
def prepare_proxy_head_params(w, b, *, param_dtype=jnp.bfloat16):
    """Pad out_dim to a multiple of 128 (lane-dense stores; zero columns add 0
    to the squared norm) and cast W to the MXU compute dtype. Returns
    (w_prepared, b_prepared, out_dim)."""
    in_dim, out_dim = w.shape
    out_dim_p = _round_up(out_dim, 128)
    if out_dim_p != out_dim:
        w = jnp.pad(w, ((0, 0), (0, out_dim_p - out_dim)))
        b = jnp.pad(b, (0, out_dim_p - out_dim))
    w_p = w.astype(param_dtype)
    b_p = b.reshape(1, out_dim_p).astype(jnp.float32)
    return w_p, b_p, out_dim


# --------------------------------------------------------------------------- #
# Forward
# --------------------------------------------------------------------------- #
def proxy_head_apply(x, w_p, b_p, out_dim, *, out_dtype=None, max_tile_b=1024):
    """x: (N, in_dim) native dtype; w_p: (in_dim, out_dim_p) prepared weight;
    b_p: (1, out_dim_p) f32 prepared bias."""
    N, in_dim = x.shape
    in_dim_w, out_dim_p = w_p.shape
    assert in_dim == in_dim_w, "x / prepared-weight in_dim mismatch"
    out_dtype = x.dtype if out_dtype is None else out_dtype

    # Generation-aware VMEM policy (128 MiB on v5e/v6e, 64 MiB on v7x).
    cap = _vmem_capacity_bytes()
    vmem_limit_bytes = int(cap * 0.78)          # ~100 MiB v5e/v6e, ~50 MiB v7x
    buffer_budget = int(vmem_limit_bytes * 0.65)

    single_buffer = _buffered1_supported()

    x_bytes = jnp.dtype(x.dtype).itemsize
    w_bytes = jnp.dtype(w_p.dtype).itemsize
    o_bytes = jnp.dtype(out_dtype).itemsize
    row_align = 16 if w_p.dtype == jnp.bfloat16 else 8

    # VMEM accounting: resident weight/bias + per-row pipeline buffers
    # (double-buffered x, double-buffered out, f32 `y` intermediate w/ headroom).
    w_copies = 1 if single_buffer else 2
    fixed = w_copies * (in_dim * out_dim_p * w_bytes + out_dim_p * 4)
    per_row = 2 * in_dim * x_bytes + 2 * out_dim_p * o_bytes + 2 * out_dim_p * 4
    if buffer_budget > fixed:
        tb = (buffer_budget - fixed) // per_row
    else:
        tb = row_align  # weight barely fits; TODO(synk): K/out split for huge weights
    tb = min(int(tb), max_tile_b, _round_up(N, row_align))
    tb = max(row_align, (tb // row_align) * row_align)

    grid = (pl.cdiv(N, tb),)  # partial last block: reads isolated per-row, writes masked

    if single_buffer:
        # Grid-invariant params: single-buffer so the pipeline doesn't allocate
        # a useless second VMEM copy (matters most on v7x).
        w_spec = pl.BlockSpec((in_dim, out_dim_p), lambda i: (0, 0),
                              pipeline_mode=pl.Buffered(1))
        b_spec = pl.BlockSpec((1, out_dim_p), lambda i: (0, 0),
                              pipeline_mode=pl.Buffered(1))
    else:
        w_spec = pl.BlockSpec((in_dim, out_dim_p), lambda i: (0, 0))
        b_spec = pl.BlockSpec((1, out_dim_p), lambda i: (0, 0))

    out = pl.pallas_call(
        proxy_head_kernel,
        out_shape=jax.ShapeDtypeStruct((N, out_dim_p), out_dtype),
        grid_spec=pltpu.PrefetchScalarGridSpec(
            num_scalar_prefetch=0,
            grid=grid,
            in_specs=[
                pl.BlockSpec((tb, in_dim), lambda i: (i, 0)),   # x tile (native dtype)
                w_spec,                                         # full weight (resident)
                b_spec,                                         # bias row (resident)
            ],
            out_specs=pl.BlockSpec((tb, out_dim_p), lambda i: (i, 0)),
        ),
        compiler_params=pltpu.CompilerParams(
            dimension_semantics=("parallel",),
            vmem_limit_bytes=vmem_limit_bytes,
        ),
    )(x, w_p, b_p)

    return out if out_dim == out_dim_p else out[:, :out_dim]


def proxy_head(x, w, b, *, param_dtype=jnp.bfloat16, out_dtype=None,
               max_tile_b=1024):
    """One-shot convenience wrapper (prepares params then applies).
    For repeated use, call prepare_proxy_head_params once and reuse w_p/b_p."""
    w_p, b_p, out_dim = prepare_proxy_head_params(w, b, param_dtype=param_dtype)
    return proxy_head_apply(x, w_p, b_p, out_dim, out_dtype=out_dtype,
                            max_tile_b=max_tile_b)


# --------------------------------------------------------------------------- #
# Demo / correctness check
# --------------------------------------------------------------------------- #
if __name__ == "__main__":
    def reference(x, w, b):
        y = x.astype(jnp.float32) @ w.astype(jnp.float32) + b
        n = jnp.maximum(jnp.linalg.norm(y, axis=1, keepdims=True), 1e-12)
        return y / n

    key = jax.random.PRNGKey(0)
    kx, kw, kb, kx2, kw2, kb2 = jax.random.split(key, 6)

    # Test 1: ProxyHead(in_dim=32, out_dim=128), bf16 params, ragged batch of
    # 40 rows with max_tile_b=16 -> 3 grid steps incl. a partial last block.
    N, in_dim, out_dim = 40, 32, 128
    bound = 1.0 / (in_dim ** 0.5)
    w = jax.random.uniform(kw, (in_dim, out_dim), jnp.float32, -bound, bound)
    b = jax.random.uniform(kb, (out_dim,), jnp.float32, -bound, bound)
    x = jax.random.normal(kx, (N, in_dim), jnp.float32)

    w_p, b_p, od = prepare_proxy_head_params(w, b)            # once per param set
    out = jax.block_until_ready(proxy_head_apply(x, w_p, b_p, od, max_tile_b=16))
    ref = reference(x, w, b)
    assert out.shape == ref.shape
    assert jnp.allclose(out, ref, atol=2e-2, rtol=2e-2), "mismatch vs reference (bf16 path)"

    # Test 2: exact f32 path, ragged batch (N=9) and non-128-multiple out_dim
    # (96) to exercise output-column padding + partial-block masking.
    N2, in2, od2 = 9, 32, 96
    bound2 = 1.0 / (in2 ** 0.5)
    w2 = jax.random.uniform(kw2, (in2, od2), jnp.float32, -bound2, bound2)
    b2 = jax.random.uniform(kb2, (od2,), jnp.float32, -bound2, bound2)
    x2 = jax.random.normal(kx2, (N2, in2), jnp.float32)
    out2 = jax.block_until_ready(proxy_head(x2, w2, b2, param_dtype=jnp.float32))
    ref2 = reference(x2, w2, b2)
    assert out2.shape == ref2.shape
    assert jnp.allclose(out2, ref2, atol=1e-5, rtol=1e-5), "mismatch vs reference (f32 path)"

    print("KERNEL_OK")
</pallas_src>

<mosaic_0001>
module attributes {stable_mosaic.version = 11 : i64} {
  func.func @_copy(%arg0: i32, %arg1: memref<8x128xf32, #tpu.memory_space<vmem>>, %arg2: memref<8x128xf32, #tpu.memory_space<vmem>>) attributes {dimension_semantics = [#tpu.dimension_semantics<arbitrary>], iteration_bounds = array<i64: 1>, scalar_prefetch = 0 : i64, scratch_operands = 0 : i64, tpu.core_type = #tpu.core_type<tc>, window_params = [{pipeline_mode = #tpu.pipeline_mode<synchronous>, transform_indices = @transform_0, window_bounds = array<i64: 8, 128>}, {pipeline_mode = #tpu.pipeline_mode<synchronous>, transform_indices = @transform_1, window_bounds = array<i64: 8, 128>}]} {
    %c0 = arith.constant 0 : index
    %c0_0 = arith.constant 0 : index
    %0 = vector.load %arg1[%c0, %c0_0] : memref<8x128xf32, #tpu.memory_space<vmem>>, vector<8x128xf32>
    %c0_1 = arith.constant 0 : index
    %c0_2 = arith.constant 0 : index
    %1 = vector.load %arg2[%c0_1, %c0_2] : memref<8x128xf32, #tpu.memory_space<vmem>>, vector<8x128xf32>
    tpu.vector_store %arg2[%c0_1, %c0_2], %0 {strides = array<i32>} : memref<8x128xf32, #tpu.memory_space<vmem>>, vector<8x128xf32>,
    return
  }
  func.func @transform_0(%arg0: i32) -> (i32, i32) {
    %c0_i32 = arith.constant 0 : i32
    %c0_i32_0 = arith.constant 0 : i32
    %c0_i32_1 = arith.constant 0 : i32
    return %c0_i32, %c0_i32_0 : i32, i32
  }
  func.func @transform_1(%arg0: i32) -> (i32, i32) {
    %c0_i32 = arith.constant 0 : i32
    %c0_i32_0 = arith.constant 0 : i32
    %c0_i32_1 = arith.constant 0 : i32
    return %c0_i32, %c0_i32_0 : i32, i32
  }
}

module attributes {stable_mosaic.version = 11 : i64} {
  func.func @proxy_head_kernel(%arg0: i32, %arg1: memref<16x32xf32, #tpu.memory_space<vmem>>, %arg2: memref<32x128xbf16, #tpu.memory_space<vmem>>, %arg3: memref<1x128xf32, #tpu.memory_space<vmem>>, %arg4: memref<16x128xf32, #tpu.memory_space<vmem>>) attributes {dimension_semantics = [#tpu.dimension_semantics<parallel>], iteration_bounds = array<i64: 3>, scalar_prefetch = 0 : i64, scratch_operands = 0 : i64, tpu.core_type = #tpu.core_type<tc>, window_params = [{transform_indices = @transform_0, window_bounds = array<i64: 16, 32>}, {pipeline_mode = #tpu.pipeline_mode<synchronous>, transform_indices = @transform_1, window_bounds = array<i64: 32, 128>}, {pipeline_mode = #tpu.pipeline_mode<synchronous>, transform_indices = @transform_2, window_bounds = array<i64: 1, 128>}, {transform_indices = @transform_3, window_bounds = array<i64: 16, 128>}]} {
    %c0 = arith.constant 0 : index
    %c0_0 = arith.constant 0 : index
    %0 = vector.load %arg1[%c0, %c0_0] : memref<16x32xf32, #tpu.memory_space<vmem>>, vector<16x32xf32>
    %1 = arith.truncf %0 : vector<16x32xf32> to vector<16x32xbf16>
    %c0_1 = arith.constant 0 : index
    %c0_2 = arith.constant 0 : index
    %2 = vector.load %arg2[%c0_1, %c0_2] : memref<32x128xbf16, #tpu.memory_space<vmem>>, vector<32x128xbf16>
    %cst = arith.constant dense<0.000000e+00> : vector<16x128xf32>
    %3 = tpu.matmul %1, %2, %cst {dimension_numbers = #tpu.dot_dimension_numbers<[1], [0], [0], [1], [0, 0, 1, 1], [], []>} : vector<16x32xbf16>, vector<32x128xbf16>, vector<16x128xf32> -> vector<16x128xf32>
    %c0_3 = arith.constant 0 : index
    %c0_4 = arith.constant 0 : index
    %4 = vector.load %arg3[%c0_3, %c0_4] : memref<1x128xf32, #tpu.memory_space<vmem>>, vector<1x128xf32>
    %5 = vector.broadcast %4 : vector<1x128xf32> to vector<16x128xf32>
    %6 = arith.addf %3, %5 : vector<16x128xf32>
    %7 = arith.mulf %6, %6 : vector<16x128xf32>
    %cst_5 = arith.constant dense<0.000000e+00> : vector<16xf32>
    %8 = vector.multi_reduction <add>, %7, %cst_5 [1] : vector<16x128xf32> to vector<16xf32>
    %9 = vector.shape_cast %8 : vector<16xf32> to vector<16x1xf32>
    %cst_6 = arith.constant 1.000000e-24 : f32
    %10 = vector.broadcast %cst_6 : f32 to vector<16x1xf32>
    %11 = arith.maximumf %9, %10 : vector<16x1xf32>
    %12 = math.rsqrt %11 : vector<16x1xf32>
    %13 = vector.broadcast %12 : vector<16x1xf32> to vector<16x128xf32>
    %14 = arith.mulf %6, %13 : vector<16x128xf32>
    %c0_7 = arith.constant 0 : index
    %c0_8 = arith.constant 0 : index
    %15 = vector.load %arg4[%c0_7, %c0_8] : memref<16x128xf32, #tpu.memory_space<vmem>>, vector<16x128xf32>
    tpu.vector_store %arg4[%c0_7, %c0_8], %14 {strides = array<i32>} : memref<16x128xf32, #tpu.memory_space<vmem>>, vector<16x128xf32>,
    return
  }
  func.func @transform_0(%arg0: i32) -> (i32, i32) {
    %c0_i32 = arith.constant 0 : i32
    %c0_i32_0 = arith.constant 0 : i32
    return %arg0, %c0_i32 : i32, i32
  }
  func.func @transform_1(%arg0: i32) -> (i32, i32) {
    %c0_i32 = arith.constant 0 : i32
    %c0_i32_0 = arith.constant 0 : i32
    %c0_i32_1 = arith.constant 0 : i32
    return %c0_i32, %c0_i32_0 : i32, i32
  }
  func.func @transform_2(%arg0: i32) -> (i32, i32) {
    %c0_i32 = arith.constant 0 : i32
    %c0_i32_0 = arith.constant 0 : i32
    %c0_i32_1 = arith.constant 0 : i32
    return %c0_i32, %c0_i32_0 : i32, i32
  }
  func.func @transform_3(%arg0: i32) -> (i32, i32) {
    %c0_i32 = arith.constant 0 : i32
    %c0_i32_0 = arith.constant 0 : i32
    return %arg0, %c0_i32 : i32, i32
  }
}

</mosaic_0001>

<bundles_post_ra>
// kernel: tpu_custom_call.1
= control target key start
LH: loop header
LB: loop body
LE: loop exit
PB: predicated region body
PF: predicated region fallthrough
CT: control target
= control target key end

     0   :  { %6 = vsyncpa [#allocation3], 0  ;;  %s124_s0 = inlined_call_operand.hbm [shape: f32[8,128], index: 0, kind: input, shape index: {}]   ;;  %s125_s1 = inlined_call_operand.hbm [shape: f32[8,128], index: 1, kind: output, shape index: {}]  }
   0x1   :  { %7 = vsyncpa [#allocation4], 0  ;;  %s88_s6 = smov [#allocation2]   ;;  %s40_s10 = scalar_lea.hbm %s124_s0, 128 }
   0x2   :  { %s14_s7 = sshll.u32 %s88_s6, 4  ;;  %p41_p0 = scmp.ne.s32.totalorder %s124_s0, %s40_s10  ;;  %s15_s7 = int_to_ptr.vmem [resolvable:$true] %s14_s7 }
   0x3   :  { %p44_p1 = scmp.lt.u32.totalorder %s40_s10, %s124_s0 }
   0x5   :  { %p46_p2 = pnand %p44_p1, %p41_p0 }
   0x7   :  { %49 = shalt.err (!%p46_p2)
}
   0x8   :  { %s50_s15 = scalar_lea.vmem %s15_s7, 128  ;;  %p55_p4 = scmp.lt.s32.totalorder %s15_s7, %s15_s7 }
   0x9   :  { %p51_p3 = scmp.ne.s32.totalorder %s15_s7, %s50_s15  ;;  %p56_p5 = scmp.lt.s32.totalorder %s50_s15, %s50_s15 }
   0xb   :  { %p57_p6 = por %p56_p5, %p55_p4 }
   0xd   :  { %p58_p7 = pnand %p57_p6, %p51_p3 }
   0xf   :  { %61 = shalt.err (!%p58_p7)
}
  0x10   :  { %17 = dma.hbm_to_vmem [thread:$0]  %s124_s0, 128, %s15_s7, [#allocation3]  }
  0x11   :  { %84 = dma.done.wait [#allocation3], 128  }
  0x12   :  { %85 = vsyncadd [#allocation3], 4294967168  ;;  %s89_s18 = smov [#allocation5]   ;;  %v21_v0 = vld [vmem:[#allocation2] sm:$0xff] }
  0x13   :  { %s29_s19 = sshll.u32 %s89_s18, 4  ;;  %22 = vst [vmem:[#allocation5] sm:$0xff] %v21_v0  ;;  %s30_s19 = int_to_ptr.vmem [resolvable:$true] %s29_s19 }
  0x14   :  { %s62_s20 = scalar_lea.vmem %s30_s19, 128  ;;  %p67_p9 = scmp.lt.s32.totalorder %s30_s19, %s30_s19 }
  0x15   :  { %p63_p8 = scmp.ne.s32.totalorder %s30_s19, %s62_s20  ;;  %p68_p10 = scmp.lt.s32.totalorder %s62_s20, %s62_s20 }
  0x17   :  { %p69_p11 = por %p68_p10, %p67_p9 }
  0x19   :  { %p70_p12 = pnand %p69_p11, %p63_p8 }
  0x1b   :  { %73 = shalt.err (!%p70_p12)
}
  0x1c   :  { %s74_s23 = scalar_lea.hbm %s125_s1, 128 }
  0x1d   :  { %p75_p13 = scmp.ne.s32.totalorder %s125_s1, %s74_s23  ;;  %p78_p0 = scmp.lt.u32.totalorder %s74_s23, %s125_s1 }
  0x1f   :  { %p80_p1 = pnand %p78_p0, %p75_p13 }
  0x21   :  { %83 = shalt.err (!%p80_p1)
}
  0x22   :  { %32 = dma.vmem_to_hbm [thread:$0]  %s30_s19, 128, %s125_s1, [#allocation4]  }
  0x23   :  { %86 = dma.done.wait [#allocation4], 128  }
  0x24   :  { %87 = vsyncadd [#allocation4], 4294967168 }
  0x25   :  { %36 = vsyncpa [#allocation3], 1 }
  0x26   :  { %37 = vsyncpa [#allocation4], 1 }

// kernel: tpu_custom_call.1
= control target key start
LH: loop header
LB: loop body
LE: loop exit
PB: predicated region body
PF: predicated region fallthrough
CT: control target
= control target key end

     0   :  { %8 = vsyncpa [#allocation3], 0  ;;  %s659_s0 = inlined_call_operand.vmem [shape: f32[40,32], index: 0, kind: input, shape index: {}]   ;;  %s660_s1 = inlined_call_operand.vmem [shape: bf16[32,128], index: 1, kind: input, shape index: {}]   ;;  %s661_s2 = inlined_call_operand.vmem [shape: f32[1,128], index: 2, kind: input, shape index: {}]   ;;  %s662_s3 = inlined_call_operand.hbm [shape: f32[40,128], index: 3, kind: output, shape index: {}]  }
   0x1   :  { %10 = vsyncpa [#allocation3 + $0x1], 0  ;;  %s533_s12 = smov 0   ;;  %s535_s13 = smov 0  }
   0x2   :  { %s537_s14 = smov 0   ;;  %s539_s15 = smov 0  }
   0x3 LB: > { %s554_s16 = sadd.s32 4294967295, %s506_s15   ;;  %s364_s17 = sadd.s32 4294967294, %s506_s15   ;;  %s506_s15 = sphi %s539_s15, %s668_s15   ;;  %s502_s14 = sphi %s537_s14, %s667_s14   ;;  %s498_s13 = sphi %s535_s13, %s666_s13   ;;  %s494_s12 = sphi %s533_s12, %s665_s12  }
   0x4   : > { %s558_s18 = sadd.s32 1, %s506_s15   ;;  %s91_s19 = sadd.s32 1, %s502_s14 }
   0x5   : > { %s88_s20 = ssub.s32 %s506_s15, %s558_s18  ;;  %p101_p0 = scmp.ne.s32.totalorder %s502_s14, %s498_s13 }
   0x6   : > { %p89_p1 = scmp.eq.s32.totalorder %s88_s20, 0  ;;  %p102_p2 = scmp.eq.s32.totalorder %s554_s16, 2 }
   0x7   : > { %p107_p3 = scmp.ne.s32.totalorder %s498_s13, %s494_s12  ;;  %p108_p4 = scmp.eq.s32.totalorder %s364_s17, 2 }
   0x8   : > { %s569_s21 = scalar_select %p89_p1, %s502_s14, %s91_s19  }
   0x9   : > { %p571_p5 = por %p102_p2, %p101_p0  ;;  %p575_p6 = por %p108_p4, %p107_p3 }
   0xa   : > { %p367_p7 = scmp.ge.s32.totalorder %s506_s15, 1  ;;  %p149_p8 = scmp.lt.s32.totalorder %s506_s15, 4 }
   0xc   : > { %p150_p9 = pnand %p367_p7, %p149_p8 }
   0xd   : > { %v438_v0 = vld [vmem:[%s660_s1] sm:$0xff] (!%p150_p9)   ;;  %v508_v1 = vmov (!%p150_p9), 0.0   ;;  %v439_v2 = vld [vmem:[%s660_s1 + $0x8] sm:$0xff] (!%p150_p9)   ;;  %vm509_vm0 = vmmov (!%p150_p9), 0   ;;  %s588_s28 = sshll.u32 (!%p150_p9), %s554_s16, 1  ;;  %vm223_vm1 = vcmask (!%p150_p9), 261120  }
   0xe   : > { %153 = sbr.rel (%p150_p9) target bundleno = 434 (0x1b2), region = 32  ;;  %388 = vmatprep.subr.bf16.mxu0 (!%p150_p9), %v508_v1  ;;  %392 = vmatprep.mubr.msk.bf16.mxu0 (!%p150_p9), %vm509_vm0, %v508_v1  ;;  %p182_p10 = scmp.lt.s32.totalorder (!%p150_p9), %s588_s28, 4  ;;  %v371_v6 = vld [vmem:[%s661_s2] ss:$0 sm:$0xff] (!%p150_p9) }
   0xf   : > { %389 = vmatpush3.bf16.msra.mxu0 (!%p150_p9), %v438_v0  ;;  %s174_s9 = sand.u32 (!%p150_p9), 1, %s498_s13  }
  0x10   : > { %390 = vmatprep.subr.bf16.mxu0 (!%p150_p9), %v508_v1  ;;  %s368_s10 = sshll.u32 (!%p150_p9), %s174_s9, 4  ;;  %s599_s17 = scalar_lea.sflag (!%p150_p9), [#allocation3], %s174_s9 }
  0x11   : > { %s176_s11 = scalar_lea.vmem (!%p150_p9), [#allocation2], %s368_s10 }
  0x13   : > { %391 = vmatpush3.bf16.msra.mxu0 (!%p150_p9), %v439_v2 }
  0x15   : > { %s183_s29 = scalar_select %p182_p10, %s588_s28, 4 }
  0x16   : > { %s291_s19 = ssub.s32 (%p571_p5), 5, %s588_s28 }
  0x17   : > { %s370_s30 = sshll.u32 %s183_s29, 3  ;;  %p292_p11 = scmp.lt.s32.totalorder (%p571_p5), %s291_s19, 2 }
  0x18   : > { %s185_s6 = scalar_lea.vmem %s659_s0, %s370_s30 }
  0x19   : > { %v197_v3 = vld [vmem:[%s185_s6] sm:$0xff]  ;;  %v198_v4 = vld [vmem:[%s185_s6 + $0x8] sm:$0xff] }
  0x1a   : > { %v199_v5 = vpack.c.bf16 %v198_v4, %v197_v3 }
  0x1c   : > { %393 = vmatmul.mubr.msk.bf16.vlgmr.msra.gmra.mrb[0].mxu0 %vm223_vm1, %v199_v5 }
  0xef   : > { %v261_v7 = vpop.f32.mrb[0].mxu0 }
  0xf0   : > { %v262_v8 = vadd.f32 %v371_v6, %v261_v7  ;;  %v394_v9 = vpop.f32.mrb[1].mxu0 }
  0xf1   : > { %v264_v10 = vpop.f32.mrb[2].mxu0 }
  0xf2   : > { %v265_v11 = vadd.f32 %v371_v6, %v264_v10  ;;  %v395_v12 = vpop.f32.mrb[3].mxu0  ;;  %v268_v13 = vmul.f32 %v262_v8, %v262_v8 }
  0xf4   : > { %270 = vadd.xlane.f32.xlu0 %v268_v13  ;;  %v269_v14 = vmul.f32 %v265_v11, %v265_v11 }
  0xf8   : > { %272 = vadd.xlane.f32.xlu0 %v269_v14 }
 0x181   : > { %v271_v15 = vpop.xlane.xlu0 %270 }
 0x182   : > { %v274_v16 = vmax.f32 %v271_v15, 1e-24 }
 0x184   : > { %440 = vrsqrt.f32 %v274_v16 }
 0x185   : > { %v273_v17 = vpop.xlane.xlu0 %272 }
 0x186   : > { %v275_v18 = vmax.f32 %v273_v17, 1e-24 }
 0x188   : > { %442 = vrsqrt.f32 %v275_v18 }
 0x18e   : > { %v441_v19 = vpop.eup %440 }
 0x18f   : > { %v278_v20 = vmul.f32 %v441_v19, %v262_v8  ;;  %289 = sbr.rel (!%p571_p5) target bundleno = 434 (0x1b2), region = 36 }
 0x191   : > { %280 = vst [vmem:[%s176_s11] sm:$0xff] %v278_v20 }
 0x192   : > { %v443_v21 = vpop.eup %442 }
 0x193   : > { %v279_v22 = vmul.f32 %v443_v21, %v265_v11 }
 0x195   : > { %281 = vst [vmem:[%s176_s11 + $0x8] sm:$0xff] %v279_v22 }
 0x196   : > { %s670_s19 = smov (!%p292_p11, %s291_s19), 2 }
 0x197   : > { %s604_s20 = sshll.u32 %s670_s19, 7 }
 0x198   : > { %s296_s24 = ssub.s32 256, %s604_s20 }
 0x199   : > { %297 = vsyncadd %s599_s17, %s296_s24  ;;  %p378_p12 = scmp.ne.s32.totalorder %s604_s20, 0  ;;  %s384_s25 = sshll.u32 %s554_s16, 8 }
 0x19a   : > { %s613_s22 = scalar_lea.hbm %s662_s3, %s384_s25  ;;  %s302_s29 = sshll.u32 %s176_s11, 4  ;;  %s615_s29 = int_to_ptr.vmem [resolvable:$true] %s302_s29 }
 0x19b   : > { %s444_s28 = scalar_lea.vmem %s615_s29, %s604_s20  ;;  %s510_s30 = smov [#allocation2]  }
 0x19c   : > { %p445_p13 = scmp.ne.s32.totalorder %s615_s29, %s444_s28  ;;  %s448_s4 = sshll.u32 %s510_s30, 4  ;;  %s449_s4 = int_to_ptr.vmem [resolvable:$false] %s448_s4 }
 0x19d   : > { %s450_s16 = scalar_lea.vmem %s449_s4, 512  ;;  %p451_p2 = scmp.lt.s32.totalorder %s615_s29, %s449_s4 }
 0x19e   : > { %p446_p0 = pnand %p445_p13, %p378_p12  ;;  %p452_p3 = scmp.lt.s32.totalorder %s450_s16, %s444_s28 }
 0x1a0   : > { %p447_p1 = pneg %p446_p0  ;;  %p453_p4 = por %p452_p3, %p451_p2 }
 0x1a2   : > { %p454_p5 = pnand %p453_p4, %p447_p1 }
 0x1a4   : > { %457 = shalt.err (!%p454_p5)
}
 0x1a5   : > { %s458_s5 = scalar_lea.hbm %s613_s22, %s604_s20  ;;  %s462_s8 = scalar_lea.hbm %s662_s3, 640 }
 0x1a6   : > { %p459_p7 = scmp.ne.s32.totalorder %s613_s22, %s458_s5  ;;  %p463_p10 = scmp.lt.u32.totalorder %s613_s22, %s662_s3 }
 0x1a7   : > { %p464_p11 = scmp.lt.u32.totalorder %s462_s8, %s458_s5  ;;  %p466_p0 = scmp.lt.u32.totalorder %s458_s5, %s613_s22 }
 0x1a8   : > { %p460_p8 = pnand %p459_p7, %p378_p12 }
 0x1a9   : > { %p465_p13 = por %p464_p11, %p463_p10 }
 0x1aa   : > { %p461_p9 = pneg %p460_p8 }
 0x1ab   : > { %p467_p1 = por %p466_p0, %p465_p13 }
 0x1ad   : > { %p468_p2 = pnand %p467_p1, %p461_p9 }
 0x1af   : > { %471 = shalt.err (!%p468_p2)
}
 0x1b0   : > { %s511_s11 = smov 128   ;;  %s512_s19 = smov 8  }
 0x1b1   : > { %308 = dma.vmem_to_hbm [thread:$0]  (%p378_p12), %s615_s29, %s604_s20, %s613_s22, %s599_s17, %s511_s11, %s511_s11, %s512_s19  }
 0x1b2 PF: > { %p401_p3 = scmp.ge.s32.totalorder %s506_s15, 2  ;;  %s317_s24 = sand.u32 1, %s494_s12  }
 0x1b3   : > { %s318_s25 = scalar_lea.sflag [#allocation3], %s317_s24 }
 0x1b4   : > { %p398_p4 = pnand %p401_p3, %p575_p6 }
 0x1b6   : > { %489 = dma.done.wait (!%p398_p4), %s318_s25, 256  }
 0x1b7   : > { %491 = vsyncadd (!%p398_p4), %s318_s25, 4294967040  ;;  %p13_p5 = scmp.ge.s32.totalorder %s558_s18, 5   ;;  %s665_s12 = smov %s498_s13 }
 0x1b8   : > { %s666_s13 = smov %s502_s14  ;;  %s667_s14 = smov %s569_s21 }
 0x1b9   : > { %s668_s15 = smov %s558_s18  ;;  %15 = sbr.rel (!%p13_p5) target bundleno = 3 (0x3), region = 67 }
 0x1c0   :  { %323 = vsyncpa [#allocation3], 1 }
 0x1c1   :  { %325 = vsyncpa [#allocation3 + $0x1], 1 }

</bundles_post_ra>
